<compile_context>
chip_gen: v7x
topology: tpu7x:2x2x1
jax: 0.10.0
libtpu: 0.0.40
codegen_flags: <defaults>
</compile_context>

<pallas_src>
import functools

import jax
import jax.numpy as jnp
from jax.experimental import pallas as pl
from jax.experimental.pallas import tpu as pltpu


# ----------------------------------------------------------------------------
# Kernels
# ----------------------------------------------------------------------------


def _gcn_c_fused_kernel(*refs, num_layers):
    """All layers fused; every operand fully resident in VMEM (small N)."""
    # refs = (adj, x, W_0, b_0, ..., W_{L-1}, b_{L-1}, out)
    adj_ref = refs[0]      # (N, N)       bf16
    x_ref = refs[1]        # (N, F0p)     bf16
    out_ref = refs[-1]     # (N, FLp)     f32
    wb_refs = refs[2:-1]

    adj = adj_ref[...]     # already bf16 (cast done in the wrapper)
    h = x_ref[...]         # bf16 activations
    for li in range(num_layers):
        w = wb_refs[2 * li][...]          # (F_in_p, F_out_p) bf16
        b = wb_refs[2 * li + 1][...]      # (1, F_out_p)      f32
        # Linear: z = h @ W + b   (MXU bf16 operands, f32 accumulation)
        z = jnp.dot(h, w, preferred_element_type=jnp.float32) + b
        # Aggregation: y = adj @ z
        y = jnp.dot(adj, z.astype(jnp.bfloat16),
                    preferred_element_type=jnp.float32)
        if li < num_layers - 1:
            h = jnp.maximum(y, 0.0).astype(jnp.bfloat16)   # ReLU, keep bf16
        else:
            h = y
    out_ref[...] = h.astype(out_ref.dtype)


def _gcn_layer_tiled_kernel(adj_ref, h_ref, w_ref, b_ref, out_ref, acc_ref, *,
                            apply_relu):
    """One GCN layer: out[rows] = act( adj[rows, :] @ (h @ W + b) ).

    grid = (row_tiles, k_tiles); k is the reduction over adj columns.
    adj tile: (tm, tk) bf16; h chunk: (tk, F_in) bf16; W, b whole.
    """
    k = pl.program_id(1)

    @pl.when(k == 0)
    def _():
        acc_ref[...] = jnp.zeros_like(acc_ref)

    # z chunk for this k-slice of nodes: (tk, F_out).  The bias is per node
    # row, so applying it chunk-wise is exact.
    z = jnp.dot(h_ref[...], w_ref[...],
                preferred_element_type=jnp.float32) + b_ref[...]
    acc_ref[...] += jnp.dot(adj_ref[...], z.astype(jnp.bfloat16),
                            preferred_element_type=jnp.float32)

    @pl.when(k == pl.num_programs(1) - 1)
    def _():
        y = acc_ref[...]
        if apply_relu:
            y = jnp.maximum(y, 0.0)
        out_ref[...] = y.astype(out_ref.dtype)


# ----------------------------------------------------------------------------
# Wrapper
# ----------------------------------------------------------------------------


def _round_up(x, m):
    return ((x + m - 1) // m) * m


def _pad_axis(a, target, axis):
    pad = target - a.shape[axis]
    if pad <= 0:
        return a
    widths = [(0, 0)] * a.ndim
    widths[axis] = (0, pad)
    return jnp.pad(a, widths)


def _vmem_limit_bytes():
    """Scoped-VMEM limit: most of physical capacity, with headroom."""
    try:
        cap = int(pltpu.get_tpu_info().vmem_capacity_bytes)
    except Exception:  # pragma: no cover - conservative fallback
        cap = 64 * 1024 * 1024
    return max(32 * 1024 * 1024, min(int(cap * 0.85), 100 * 1024 * 1024))


def _fused_vmem_bytes(n, pdims):
    """Rough VMEM footprint estimate of the fused whole-array path."""
    b = 2 * n * n                            # adj bf16
    b += 2 * n * pdims[0]                    # x bf16
    for fi, fo in zip(pdims[:-1], pdims[1:]):
        b += 2 * fi * fo + 4 * fo            # W bf16 + b f32
    b += 4 * n * pdims[-1]                   # out f32
    b += 6 * n * max(pdims) * 4              # working activations (generous)
    return b


def _gcn_layer_tiled(adj_bf16, h, w, b, *, apply_relu, out_dtype, tm, tk,
                     vmem_limit):
    n = adj_bf16.shape[0]
    f_in, f_out = w.shape
    kernel = functools.partial(_gcn_layer_tiled_kernel, apply_relu=apply_relu)
    return pl.pallas_call(
        kernel,
        out_shape=jax.ShapeDtypeStruct((n, f_out), out_dtype),
        grid_spec=pltpu.PrefetchScalarGridSpec(
            num_scalar_prefetch=0,
            grid=(n // tm, n // tk),
            in_specs=[
                pl.BlockSpec((tm, tk), lambda i, k: (i, k)),       # adj tile
                pl.BlockSpec((tk, f_in), lambda i, k: (k, 0)),     # h k-chunk
                pl.BlockSpec((f_in, f_out), lambda i, k: (0, 0)),  # W (whole)
                pl.BlockSpec((1, f_out), lambda i, k: (0, 0)),     # b (whole)
            ],
            out_specs=pl.BlockSpec((tm, f_out), lambda i, k: (i, 0)),
            scratch_shapes=[pltpu.VMEM((tm, f_out), jnp.float32)],
        ),
        compiler_params=pltpu.CompilerParams(
            dimension_semantics=("parallel", "arbitrary"),
            vmem_limit_bytes=vmem_limit),
    )(adj_bf16, h, w, b)


def gcn_c_forward(params, x, adj, *, force_tiled=False, tile=None):
    """GCN_C.forward (eval mode) with Pallas kernels."""
    n, f0 = x.shape
    num_layers = len(params)
    out_ch = params[-1][0].shape[1]

    # Lane-dense padding of every feature dimension.
    dims = [f0] + [params[li][0].shape[1] for li in range(num_layers)]
    pdims = [_round_up(d, 128) for d in dims]

    # bf16 casts in the wrapper (not inside the kernel).
    adj_bf16 = adj.astype(jnp.bfloat16)
    x_bf16 = _pad_axis(x, pdims[0], 1).astype(jnp.bfloat16)

    ws, bs = [], []
    for li, (w, b) in enumerate(params):
        w = _pad_axis(_pad_axis(w, pdims[li], 0), pdims[li + 1], 1)
        ws.append(w.astype(jnp.bfloat16))
        bs.append(_pad_axis(b.reshape(1, -1), pdims[li + 1], 1)
                  .astype(jnp.float32))

    vmem_limit = _vmem_limit_bytes()
    use_tiled = force_tiled or (_fused_vmem_bytes(n, pdims)
                                > 0.5 * vmem_limit)

    if not use_tiled:
        # Fused path: one launch, adj read from HBM exactly once for all layers.
        flat_wb = []
        for w, b in zip(ws, bs):
            flat_wb += [w, b]
        kernel = functools.partial(_gcn_c_fused_kernel, num_layers=num_layers)
        vmem_spec = pl.BlockSpec(memory_space=pltpu.MemorySpace.VMEM)
        out = pl.pallas_call(
            kernel,
            out_shape=jax.ShapeDtypeStruct((n, pdims[-1]), jnp.float32),
            in_specs=[vmem_spec] * (2 + len(flat_wb)),
            out_specs=vmem_spec,
            compiler_params=pltpu.CompilerParams(
                vmem_limit_bytes=vmem_limit),
        )(adj_bf16, x_bf16, *flat_wb)
    else:
        # Tiled path: per-layer row-parallel / k-reduction grid.  512+ tiles
        # reach ~85% of HBM roofline; sweep larger tiles per generation.
        if tile is None:
            tile = 512 if n >= 512 else _round_up(n, 128)
        assert tile % 128 == 0, "tile must be a multiple of 128"
        n_pad = _round_up(n, tile)
        a = adj_bf16
        h = x_bf16
        if n_pad != n:
            a = jnp.pad(a, ((0, n_pad - n), (0, n_pad - n)))
            h = jnp.pad(h, ((0, n_pad - n), (0, 0)))
        for li in range(num_layers):
            last = (li == num_layers - 1)
            h = _gcn_layer_tiled(
                a, h, ws[li], bs[li],
                apply_relu=not last,
                out_dtype=jnp.float32 if last else jnp.bfloat16,
                tm=tile, tk=tile, vmem_limit=vmem_limit)
        out = h[:n] if n_pad != n else h

    # TODO(synk): drop this slice if the consumer accepts the padded output.
    return out[:, :out_ch]


def init_gcn_c_params(key, in_channels, hidden_channels, out_channels,
                      num_layers):
    """Deterministic parameter init matching the GCNEncoder layer shapes."""
    dims = [in_channels] + [hidden_channels] * (num_layers - 1) + [out_channels]
    params = []
    for li in range(num_layers):
        f_in, f_out = dims[li], dims[li + 1]
        key, kw, kb = jax.random.split(key, 3)
        bound = 1.0 / jnp.sqrt(jnp.array(f_in, jnp.float32))
        w = jax.random.uniform(kw, (f_in, f_out), jnp.float32, -bound, bound)
        b = jax.random.uniform(kb, (f_out,), jnp.float32, -bound, bound)
        params.append((w, b))
    return params


def _reference(params, x, adj, num_layers):
    ref = x
    for li, (w, b) in enumerate(params):
        h = ref @ w + b
        h = adj @ h
        ref = jnp.maximum(h, 0.0) if li < num_layers - 1 else h
    return ref


def _make_graph(key, n, in_channels):
    k_x, k_adj = jax.random.split(key)
    x = jax.random.normal(k_x, (n, in_channels), dtype=jnp.float32)
    a = jax.random.uniform(k_adj, (n, n), dtype=jnp.float32)
    a = (a > 0.8).astype(jnp.float32)
    adj = a + a.T + jnp.eye(n, dtype=jnp.float32)
    adj = adj / jnp.maximum(adj.sum(axis=1, keepdims=True), 1.0)
    return x, adj


if __name__ == "__main__":
    key = jax.random.PRNGKey(0)
    k_g1, k_p1, k_g2, k_p2 = jax.random.split(key, 4)

    # ---- Small graph: fused single-launch path --------------------------
    N = 64
    in_channels, hidden_channels, out_channels, num_layers = 32, 32, 16, 2
    x, adj = _make_graph(k_g1, N, in_channels)
    params = init_gcn_c_params(k_p1, in_channels, hidden_channels,
                               out_channels, num_layers)

    fwd = jax.jit(gcn_c_forward)
    out = jax.block_until_ready(fwd(params, x, adj))
    ref = _reference(params, x, adj, num_layers)
    assert out.shape == (N, out_channels)
    assert jnp.allclose(out, ref, atol=5e-2, rtol=5e-2), (
        float(jnp.max(jnp.abs(out - ref))))

    # ---- Larger graph: row-parallel / k-reduction tiled path ------------
    N2, num_layers2 = 256, 3
    x2, adj2 = _make_graph(k_g2, N2, in_channels)
    params2 = init_gcn_c_params(k_p2, in_channels, hidden_channels,
                                out_channels, num_layers2)

    fwd_tiled = jax.jit(functools.partial(gcn_c_forward,
                                          force_tiled=True, tile=128))
    out2 = jax.block_until_ready(fwd_tiled(params2, x2, adj2))
    ref2 = _reference(params2, x2, adj2, num_layers2)
    assert out2.shape == (N2, out_channels)
    assert jnp.allclose(out2, ref2, atol=5e-2, rtol=5e-2), (
        float(jnp.max(jnp.abs(out2 - ref2))))

    print("KERNEL_OK")
</pallas_src>

<mosaic_0001>
module attributes {stable_mosaic.version = 11 : i64} {
  func.func @_gcn_c_fused_kernel(%arg0: memref<64x64xbf16, #tpu.memory_space<vmem>>, %arg1: memref<64x128xbf16, #tpu.memory_space<vmem>>, %arg2: memref<128x128xbf16, #tpu.memory_space<vmem>>, %arg3: memref<1x128xf32, #tpu.memory_space<vmem>>, %arg4: memref<128x128xbf16, #tpu.memory_space<vmem>>, %arg5: memref<1x128xf32, #tpu.memory_space<vmem>>, %arg6: memref<64x128xf32, #tpu.memory_space<vmem>>) attributes {dimension_semantics = [], scalar_prefetch = 0 : i64, scratch_operands = 0 : i64, tpu.core_type = #tpu.core_type<tc>} {
    %c0 = arith.constant 0 : index
    %c0_0 = arith.constant 0 : index
    %0 = vector.load %arg0[%c0, %c0_0] : memref<64x64xbf16, #tpu.memory_space<vmem>>, vector<64x64xbf16>
    %c0_1 = arith.constant 0 : index
    %c0_2 = arith.constant 0 : index
    %1 = vector.load %arg1[%c0_1, %c0_2] : memref<64x128xbf16, #tpu.memory_space<vmem>>, vector<64x128xbf16>
    %c0_3 = arith.constant 0 : index
    %c0_4 = arith.constant 0 : index
    %2 = vector.load %arg2[%c0_3, %c0_4] : memref<128x128xbf16, #tpu.memory_space<vmem>>, vector<128x128xbf16>
    %c0_5 = arith.constant 0 : index
    %c0_6 = arith.constant 0 : index
    %3 = vector.load %arg3[%c0_5, %c0_6] : memref<1x128xf32, #tpu.memory_space<vmem>>, vector<1x128xf32>
    %cst = arith.constant dense<0.000000e+00> : vector<64x128xf32>
    %4 = tpu.matmul %1, %2, %cst {dimension_numbers = #tpu.dot_dimension_numbers<[1], [0], [0], [1], [0, 0, 1, 1], [], []>} : vector<64x128xbf16>, vector<128x128xbf16>, vector<64x128xf32> -> vector<64x128xf32>
    %5 = vector.broadcast %3 : vector<1x128xf32> to vector<64x128xf32>
    %6 = arith.addf %4, %5 : vector<64x128xf32>
    %7 = arith.truncf %6 : vector<64x128xf32> to vector<64x128xbf16>
    %cst_7 = arith.constant dense<0.000000e+00> : vector<64x128xf32>
    %8 = tpu.matmul %0, %7, %cst_7 {dimension_numbers = #tpu.dot_dimension_numbers<[1], [0], [0], [1], [0, 0, 1, 1], [], []>} : vector<64x64xbf16>, vector<64x128xbf16>, vector<64x128xf32> -> vector<64x128xf32>
    %cst_8 = arith.constant 0.000000e+00 : f32
    %9 = vector.broadcast %cst_8 : f32 to vector<64x128xf32>
    %10 = arith.maximumf %8, %9 : vector<64x128xf32>
    %11 = arith.truncf %10 : vector<64x128xf32> to vector<64x128xbf16>
    %c0_9 = arith.constant 0 : index
    %c0_10 = arith.constant 0 : index
    %12 = vector.load %arg4[%c0_9, %c0_10] : memref<128x128xbf16, #tpu.memory_space<vmem>>, vector<128x128xbf16>
    %c0_11 = arith.constant 0 : index
    %c0_12 = arith.constant 0 : index
    %13 = vector.load %arg5[%c0_11, %c0_12] : memref<1x128xf32, #tpu.memory_space<vmem>>, vector<1x128xf32>
    %cst_13 = arith.constant dense<0.000000e+00> : vector<64x128xf32>
    %14 = tpu.matmul %11, %12, %cst_13 {dimension_numbers = #tpu.dot_dimension_numbers<[1], [0], [0], [1], [0, 0, 1, 1], [], []>} : vector<64x128xbf16>, vector<128x128xbf16>, vector<64x128xf32> -> vector<64x128xf32>
    %15 = vector.broadcast %13 : vector<1x128xf32> to vector<64x128xf32>
    %16 = arith.addf %14, %15 : vector<64x128xf32>
    %17 = arith.truncf %16 : vector<64x128xf32> to vector<64x128xbf16>
    %cst_14 = arith.constant dense<0.000000e+00> : vector<64x128xf32>
    %18 = tpu.matmul %0, %17, %cst_14 {dimension_numbers = #tpu.dot_dimension_numbers<[1], [0], [0], [1], [0, 0, 1, 1], [], []>} : vector<64x64xbf16>, vector<64x128xbf16>, vector<64x128xf32> -> vector<64x128xf32>
    %c0_15 = arith.constant 0 : index
    %c0_16 = arith.constant 0 : index
    %19 = vector.load %arg6[%c0_15, %c0_16] : memref<64x128xf32, #tpu.memory_space<vmem>>, vector<64x128xf32>
    tpu.vector_store %arg6[%c0_15, %c0_16], %18 {strides = array<i32>} : memref<64x128xf32, #tpu.memory_space<vmem>>, vector<64x128xf32>,
    return
  }
}

</mosaic_0001>

<bundles_post_ra>
// kernel: gcn_c_forward.1
= control target key start
LH: loop header
LB: loop body
LE: loop exit
PB: predicated region body
PF: predicated region fallthrough
CT: control target
= control target key end

     0   :  { %vm224_vm0 = vcmask 523264   ;;  %s866_s2 = inlined_call_operand.vmem [shape: bf16[128,128], index: 2, kind: input, shape index: {}]   ;;  %s867_s1 = inlined_call_operand.vmem [shape: bf16[64,128], index: 1, kind: input, shape index: {}]   ;;  %s868_s0 = inlined_call_operand.vmem [shape: bf16[64,64], index: 0, kind: input, shape index: {}]   ;;  %s869_s4 = inlined_call_operand.vmem [shape: bf16[128,128], index: 4, kind: input, shape index: {}]   ;;  %s870_s3 = inlined_call_operand.vmem [shape: f32[1,128], index: 3, kind: input, shape index: {}]   ;;  %s871_s5 = inlined_call_operand.vmem [shape: f32[1,128], index: 5, kind: input, shape index: {}]   ;;  %s872_s6 = inlined_call_operand.vmem [shape: f32[64,128], index: 6, kind: output, shape index: {}]  }
   0x1   :  { %v685_v0 = vld [vmem:[%s866_s2] sm:$0xff]   ;;  %v686_v1 = vld [vmem:[%s866_s2 + $0x8] sm:$0xff]   ;;  %v687_v2 = vld [vmem:[%s866_s2 + $0x10] sm:$0xff]  }
   0x2   :  { %605 = vmatprep.subr.bf16.mxu0 %v685_v0  ;;  %v688_v3 = vld [vmem:[%s866_s2 + $0x18] sm:$0xff]   ;;  %v693_v4 = vld [vmem:[%s867_s1] sm:$0xff]   ;;  %v690_v6 = vld [vmem:[%s866_s2 + $0x28] sm:$0xff]  }
   0x3   :  { %606 = vmatpush3.bf16.msra.mxu0 %v685_v0  ;;  %621 = vmatprep.mubr.bf16.mxu0 %v693_v4  ;;  %v689_v5 = vld [vmem:[%s866_s2 + $0x20] sm:$0xff]   ;;  %v691_v7 = vld [vmem:[%s866_s2 + $0x30] sm:$0xff]   ;;  %v692_v8 = vld [vmem:[%s866_s2 + $0x38] sm:$0xff]  }
   0x4   :  { %607 = vmatprep.subr.bf16.mxu0 %v686_v1  ;;  %v694_v9 = vld [vmem:[%s867_s1 + $0x8] sm:$0xff]   ;;  %v695_v10 = vld [vmem:[%s867_s1 + $0x10] sm:$0xff]   ;;  %v696_v11 = vld [vmem:[%s867_s1 + $0x18] sm:$0xff]  }
   0x5   :  { %v697_v12 = vld [vmem:[%s868_s0] sm:$0xff]   ;;  %v794_v35 = vld [vmem:[%s868_s0 + $0x8] sm:$0xff]   ;;  %v799_v36 = vld [vmem:[%s868_s0 + $0x10] sm:$0xff]  }
   0x6   :  { %637 = vmatprep.mubr.msk.bf16.mxu1 %vm224_vm0, %v697_v12  ;;  %v531_v14 = vld [vmem:[%s870_s3] ss:$0 sm:$0xff]  ;;  %v702_v37 = vld [vmem:[%s869_s4 + $0x8] sm:$0xff]   ;;  %v703_v38 = vld [vmem:[%s869_s4 + $0x10] sm:$0xff]  }
   0x7   :  { %608 = vmatpush3.bf16.msra.mxu0 %v686_v1  ;;  %v701_v34 = vld [vmem:[%s869_s4] sm:$0xff]   ;;  %v814_v39 = vld [vmem:[%s868_s0 + $0x18] sm:$0xff]   ;;  %v706_v42 = vld [vmem:[%s869_s4 + $0x28] sm:$0xff]  }
   0x8   :  { %609 = vmatprep.subr.bf16.mxu0 %v687_v2  ;;  %v704_v40 = vld [vmem:[%s869_s4 + $0x18] sm:$0xff]   ;;  %v705_v41 = vld [vmem:[%s869_s4 + $0x20] sm:$0xff]   ;;  %v707_v43 = vld [vmem:[%s869_s4 + $0x30] sm:$0xff]  }
   0x9   :  { %v708_v44 = vld [vmem:[%s869_s4 + $0x38] sm:$0xff]  }
   0xb   :  { %610 = vmatpush3.bf16.msra.mxu0 %v687_v2  ;;  %v552_v2 = vld [vmem:[%s871_s5] ss:$0 sm:$0xff] }
   0xc   :  { %611 = vmatprep.subr.bf16.mxu0 %v688_v3 }
   0xf   :  { %612 = vmatpush3.bf16.msra.mxu0 %v688_v3 }
  0x10   :  { %613 = vmatprep.subr.bf16.mxu0 %v689_v5 }
  0x13   :  { %614 = vmatpush3.bf16.msra.mxu0 %v689_v5 }
  0x14   :  { %615 = vmatprep.subr.bf16.mxu0 %v690_v6 }
  0x17   :  { %616 = vmatpush3.bf16.msra.mxu0 %v690_v6 }
  0x18   :  { %617 = vmatprep.subr.bf16.mxu0 %v691_v7 }
  0x1b   :  { %618 = vmatpush3.bf16.msra.mxu0 %v691_v7 }
  0x1c   :  { %619 = vmatprep.subr.bf16.mxu0 %v692_v8 }
  0x1f   :  { %620 = vmatpush3.bf16.msra.mxu0 %v692_v8 }
  0x22   :  { %622 = vmatmul.mubr.bf16.vlgmr.msra.gmra.mrb[0].mxu0 %v694_v9 }
  0x23   :  { %625 = vmatprep.mubr.bf16.mxu0 %v695_v10 }
  0x2a   :  { %626 = vmatmul.mubr.bf16.gmra.mrb[4].mxu0 %v696_v11 }
  0x2b   :  { %677 = vmatprep.mubr.msk.bf16.mxu0 %vm224_vm0, %v697_v12 }
  0xf5   :  { %v623_v13 = vpop.f32.mrb[0].mxu0 }
  0xf6   :  { %v169_v15 = vpop.f32.mrb[1].mxu0  ;;  %v178_v17 = vadd.f32 %v623_v13, %v531_v14 }
  0xf7   :  { %v624_v16 = vpop.f32.mrb[2].mxu0  ;;  %v170_v20 = vadd.f32 %v531_v14, %v169_v15 }
  0xf8   :  { %v181_v18 = vadd.f32 %v624_v16, %v531_v14  ;;  %v172_v19 = vpop.f32.mrb[3].mxu0 }
  0xf9   :  { %v173_v21 = vadd.f32 %v531_v14, %v172_v19 }
  0xfa   :  { %v201_v22 = vpack.c.bf16 %v181_v18, %v178_v17 }
  0xfb   :  { %v200_v23 = vpack.c.bf16 %v173_v21, %v170_v20 }
  0xfd   :  { %v627_v24 = vpop.f32.mrb[4].mxu0  ;;  %629 = vmatprep.subr.bf16.mxu1 %v200_v23 }
  0xfe   :  { %v185_v25 = vpop.f32.mrb[5].mxu0  ;;  %630 = vmatpush3.bf16.msra.mxu1 %v200_v23  ;;  %v194_v27 = vadd.f32 %v627_v24, %v531_v14 }
  0xff   :  { %v628_v26 = vpop.f32.mrb[6].mxu0  ;;  %631 = vmatprep.subr.bf16.mxu1 %v201_v22  ;;  %v186_v30 = vadd.f32 %v531_v14, %v185_v25 }
 0x100   :  { %v197_v28 = vadd.f32 %v628_v26, %v531_v14  ;;  %v188_v29 = vpop.f32.mrb[7].mxu0 }
 0x101   :  { %v189_v31 = vadd.f32 %v531_v14, %v188_v29 }
 0x102   :  { %v203_v32 = vpack.c.bf16 %v197_v28, %v194_v27  ;;  %632 = vmatpush3.bf16.msra.mxu1 %v201_v22 }
 0x103   :  { %v202_v33 = vpack.c.bf16 %v189_v31, %v186_v30 }
 0x105   :  { %633 = vmatprep.subr.bf16.mxu1 %v202_v33 }
 0x106   :  { %634 = vmatpush3.bf16.msra.mxu1 %v202_v33 }
 0x107   :  { %635 = vmatprep.subr.bf16.mxu1 %v203_v32 }
 0x10a   :  { %636 = vmatpush3.bf16.msra.mxu1 %v203_v32 }
 0x10b   :  { %645 = vmatprep.subr.bf16.mxu1 %v701_v34 }
 0x10d   :  { %638 = vmatmul.mubr.msk.bf16.vlgmr.msra.gmra.mrb[0].mxu1 %vm224_vm0, %v794_v35 }
 0x10e   :  { %641 = vmatprep.mubr.msk.bf16.mxu1 %vm224_vm0, %v799_v36  ;;  %646 = vmatpush3.bf16.msra.mxu1 %v701_v34 }
 0x10f   :  { %647 = vmatprep.subr.bf16.mxu1 %v702_v37 }
 0x112   :  { %648 = vmatpush3.bf16.msra.mxu1 %v702_v37 }
 0x113   :  { %649 = vmatprep.subr.bf16.mxu1 %v703_v38 }
 0x115   :  { %642 = vmatmul.mubr.msk.bf16.gmra.mrb[4].mxu1 %vm224_vm0, %v814_v39 }
 0x116   :  { %650 = vmatpush3.bf16.msra.mxu1 %v703_v38 }
 0x117   :  { %651 = vmatprep.subr.bf16.mxu1 %v704_v40 }
 0x11a   :  { %652 = vmatpush3.bf16.msra.mxu1 %v704_v40 }
 0x11b   :  { %653 = vmatprep.subr.bf16.mxu1 %v705_v41 }
 0x11e   :  { %654 = vmatpush3.bf16.msra.mxu1 %v705_v41 }
 0x11f   :  { %655 = vmatprep.subr.bf16.mxu1 %v706_v42 }
 0x122   :  { %656 = vmatpush3.bf16.msra.mxu1 %v706_v42 }
 0x123   :  { %657 = vmatprep.subr.bf16.mxu1 %v707_v43 }
 0x126   :  { %658 = vmatpush3.bf16.msra.mxu1 %v707_v43 }
 0x127   :  { %659 = vmatprep.subr.bf16.mxu1 %v708_v44 }
 0x12a   :  { %660 = vmatpush3.bf16.msra.mxu1 %v708_v44 }
 0x1e0   :  { %v639_v45 = vpop.f32.mrb[0].mxu1 }
 0x1e1   :  { %v271_v46 = vpop.f32.mrb[1].mxu1  ;;  %v304_v48 = vmax.f32 %v639_v45, 0.0 }
 0x1e2   :  { %v640_v47 = vpop.f32.mrb[2].mxu1  ;;  %v302_v51 = vmax.f32 %v271_v46, 0.0 }
 0x1e3   :  { %v305_v49 = vmax.f32 %v640_v47, 0.0  ;;  %v274_v50 = vpop.f32.mrb[3].mxu1 }
 0x1e4   :  { %v303_v52 = vmax.f32 %v274_v50, 0.0 }
 0x1e5   :  { %v311_v53 = vpack.c.bf16 %v305_v49, %v304_v48 }
 0x1e6   :  { %v310_v54 = vpack.c.bf16 %v303_v52, %v302_v51 }
 0x1e8   :  { %v643_v55 = vpop.f32.mrb[4].mxu1  ;;  %661 = vmatprep.mubr.bf16.mxu1 %v310_v54 }
 0x1e9   :  { %v287_v56 = vpop.f32.mrb[5].mxu1  ;;  %662 = vmatmul.mubr.bf16.vlgmr.msra.gmra.mrb[8].mxu1 %v311_v53  ;;  %v308_v58 = vmax.f32 %v643_v55, 0.0 }
 0x1ea   :  { %v644_v57 = vpop.f32.mrb[6].mxu1  ;;  %v306_v61 = vmax.f32 %v287_v56, 0.0 }
 0x1eb   :  { %v309_v59 = vmax.f32 %v644_v57, 0.0  ;;  %v290_v60 = vpop.f32.mrb[7].mxu1 }
 0x1ec   :  { %v307_v62 = vmax.f32 %v290_v60, 0.0 }
 0x1ed   :  { %v313_v63 = vpack.c.bf16 %v309_v59, %v308_v58 }
 0x1ee   :  { %v312_v0 = vpack.c.bf16 %v307_v62, %v306_v61 }
 0x1f0   :  { %665 = vmatprep.mubr.bf16.mxu1 %v312_v0 }
 0x1f1   :  { %666 = vmatmul.mubr.bf16.gmra.mrb[12].mxu1 %v313_v63 }
 0x2bc   :  { %v663_v1 = vpop.f32.mrb[8].mxu1 }
 0x2bd   :  { %v419_v3 = vpop.f32.mrb[9].mxu1  ;;  %v428_v5 = vadd.f32 %v663_v1, %v552_v2 }
 0x2be   :  { %v664_v4 = vpop.f32.mrb[10].mxu1  ;;  %v420_v8 = vadd.f32 %v552_v2, %v419_v3 }
 0x2bf   :  { %v431_v6 = vadd.f32 %v664_v4, %v552_v2  ;;  %v422_v7 = vpop.f32.mrb[11].mxu1 }
 0x2c0   :  { %v423_v9 = vadd.f32 %v552_v2, %v422_v7 }
 0x2c1   :  { %v451_v10 = vpack.c.bf16 %v431_v6, %v428_v5 }
 0x2c2   :  { %v450_v11 = vpack.c.bf16 %v423_v9, %v420_v8 }
 0x2c4   :  { %v667_v12 = vpop.f32.mrb[12].mxu1  ;;  %669 = vmatprep.subr.bf16.mxu0 %v450_v11 }
 0x2c5   :  { %v435_v13 = vpop.f32.mrb[13].mxu1  ;;  %670 = vmatpush3.bf16.msra.mxu0 %v450_v11  ;;  %v444_v15 = vadd.f32 %v667_v12, %v552_v2 }
 0x2c6   :  { %v668_v14 = vpop.f32.mrb[14].mxu1  ;;  %671 = vmatprep.subr.bf16.mxu0 %v451_v10  ;;  %v436_v18 = vadd.f32 %v552_v2, %v435_v13 }
 0x2c7   :  { %v447_v16 = vadd.f32 %v668_v14, %v552_v2  ;;  %v438_v17 = vpop.f32.mrb[15].mxu1 }
 0x2c8   :  { %v439_v19 = vadd.f32 %v552_v2, %v438_v17 }
 0x2c9   :  { %v453_v20 = vpack.c.bf16 %v447_v16, %v444_v15  ;;  %672 = vmatpush3.bf16.msra.mxu0 %v451_v10 }
 0x2ca   :  { %v452_v21 = vpack.c.bf16 %v439_v19, %v436_v18 }
 0x2cc   :  { %673 = vmatprep.subr.bf16.mxu0 %v452_v21 }
 0x2cd   :  { %674 = vmatpush3.bf16.msra.mxu0 %v452_v21 }
 0x2ce   :  { %675 = vmatprep.subr.bf16.mxu0 %v453_v20 }
 0x2d1   :  { %676 = vmatpush3.bf16.msra.mxu0 %v453_v20 }
 0x2d4   :  { %678 = vmatmul.mubr.msk.bf16.vlgmr.msra.gmra.mrb[8].mxu0 %vm224_vm0, %v794_v35 }
 0x2d5   :  { %681 = vmatprep.mubr.msk.bf16.mxu0 %vm224_vm0, %v799_v36 }
 0x2dc   :  { %682 = vmatmul.mubr.msk.bf16.gmra.mrb[12].mxu0 %vm224_vm0, %v814_v39 }
 0x3a7   :  { %v679_v22 = vpop.f32.mrb[8].mxu0 }
 0x3a8   :  { %521 = vst [vmem:[%s872_s6 + $0x10] sm:$0xff] %v679_v22  ;;  %v488_v23 = vpop.f32.mrb[9].mxu0 }
 0x3a9   :  { %519 = vst [vmem:[%s872_s6] sm:$0xff] %v488_v23  ;;  %v680_v24 = vpop.f32.mrb[10].mxu0 }
 0x3aa   :  { %522 = vst [vmem:[%s872_s6 + $0x18] sm:$0xff] %v680_v24  ;;  %v491_v25 = vpop.f32.mrb[11].mxu0 }
 0x3ab   :  { %520 = vst [vmem:[%s872_s6 + $0x8] sm:$0xff] %v491_v25 }
 0x3af   :  { %v683_v26 = vpop.f32.mrb[12].mxu0 }
 0x3b0   :  { %525 = vst [vmem:[%s872_s6 + $0x30] sm:$0xff] %v683_v26  ;;  %v504_v27 = vpop.f32.mrb[13].mxu0 }
 0x3b1   :  { %523 = vst [vmem:[%s872_s6 + $0x20] sm:$0xff] %v504_v27  ;;  %v684_v28 = vpop.f32.mrb[14].mxu0 }
 0x3b2   :  { %526 = vst [vmem:[%s872_s6 + $0x38] sm:$0xff] %v684_v28  ;;  %v507_v29 = vpop.f32.mrb[15].mxu0 }
 0x3b3   :  { %524 = vst [vmem:[%s872_s6 + $0x28] sm:$0xff] %v507_v29 }

</bundles_post_ra>
